<compile_context>
chip_gen: v7x
topology: tpu7x:2x2x1
jax: 0.10.0
libtpu: 0.0.40
codegen_flags: <defaults>
</compile_context>

<pallas_src>
import functools

import jax
import jax.numpy as jnp
from jax import lax
from jax.experimental import pallas as pl
from jax.experimental.pallas import tpu as pltpu


def _round_up(x, m):
    return (x + m - 1) // m * m


def actor_kernel(state_ref, mask_ref,
                 w1_ref, b1_ref, w2_ref, b2_ref, w3_ref, b3_ref,
                 out_ref):
    A = out_ref.shape[0]
    nt = (((1,), (1,)), ((), ()))            # contract minor dims of both operands

    x = state_ref[...].astype(jnp.bfloat16)                       # [tb, S]

    # fc1 + relu: N-T matmul (contract the S axis of w1 and state) -> feature-major
    # [H, tb] with the batch on the 128-wide lane axis.
    h = lax.dot_general(w1_ref[...], x, nt,
                        preferred_element_type=jnp.float32) + b1_ref[...]
    h = jnp.maximum(h, 0.0).astype(jnp.bfloat16)                  # [H, tb]

    # fc2 + relu (standard matmul, already feature-major)
    h = jnp.dot(w2_ref[...], h, preferred_element_type=jnp.float32) + b2_ref[...]
    h = jnp.maximum(h, 0.0).astype(jnp.bfloat16)                  # [H, tb]

    # mask^T via a tiny identity matmul on the MXU: [tb, A] -> [A, tb], exact 0/1 f32.
    rows = lax.broadcasted_iota(jnp.int32, (A, A), 0)
    cols = lax.broadcasted_iota(jnp.int32, (A, A), 1)
    eye = jnp.where(rows == cols, 1.0, 0.0).astype(jnp.bfloat16)
    mask_t = lax.dot_general(eye, mask_ref[...].astype(jnp.bfloat16), nt,
                             preferred_element_type=jnp.float32)  # [A, tb]

    # fc3 + bias + additive mask, all in f32
    logits = (jnp.dot(w3_ref[...], h, preferred_element_type=jnp.float32)
              + b3_ref[...] - mask_t * 1e9)                       # [A, tb]

    # numerically-stable softmax over the action (sublane) axis; exact divide keeps
    # the probabilities normalized for downstream Categorical sampling.
    m = jnp.max(logits, axis=0, keepdims=True)
    e = jnp.exp(logits - m)
    out_ref[...] = e / jnp.sum(e, axis=0, keepdims=True)


@functools.partial(jax.jit, static_argnames=("batch_tile",))
def actor_forward(state, mask, params, *, batch_tile=4096):
    """state: [B, state_dim] f32, mask: [B, action_dim] (0/1, f32 or bf16)
    -> probs [B, action_dim] f32.

    params = (w1, b1, w2, b2, w3, b3) with PyTorch nn.Linear layouts:
      w*: [out_features, in_features], b*: [out_features, 1].
    """
    w1, b1, w2, b2, w3, b3 = params
    B, S = state.shape
    H = w1.shape[0]
    A = w3.shape[0]

    # Lane-aligned batch tile (multiple of 128).  Large tiles amortize the ~0.35us
    # per-grid-step overhead, but cap the tile so the grid keeps >= 2 steps when
    # the batch allows it (both v7x TensorCores get work on the "parallel" axis).
    b128 = _round_up(B, 128)
    half = _round_up((b128 + 1) // 2, 128)
    tb = max(128, _round_up(min(batch_tile, half), 128))
    b_pad = _round_up(B, tb)

    # Only remaining wrapper-side data movement: zero-pad the ragged batch tail
    # (skipped entirely when B is already a multiple of the tile).
    if b_pad != B:
        state = jnp.pad(state, ((0, b_pad - B), (0, 0)))
        mask = jnp.pad(mask, ((0, b_pad - B), (0, 0)))

    w1b, w2b, w3b = (w.astype(jnp.bfloat16) for w in (w1, w2, w3))

    resident = lambda i: (0, 0)        # weights/biases: same block every grid step
    row_blk = lambda i: (i, 0)         # state/mask: march down the batch rows
    col_blk = lambda i: (0, i)         # output: lane-dense [A, b_pad], march along lanes

    weight_bytes = 2 * (H * S + H * H + A * H) + 4 * (2 * H + A)
    cost = pl.CostEstimate(
        flops=2 * b_pad * (S * H + H * H + H * A + A * A),
        transcendentals=b_pad * A,
        bytes_accessed=(b_pad * S * state.dtype.itemsize
                        + b_pad * A * mask.dtype.itemsize
                        + A * b_pad * 4
                        + weight_bytes),
    )

    out_t = pl.pallas_call(
        actor_kernel,
        out_shape=jax.ShapeDtypeStruct((A, b_pad), jnp.float32),
        grid=(b_pad // tb,),
        in_specs=[
            pl.BlockSpec((tb, S), row_blk),        # state   [b_pad, S]  (natural layout)
            pl.BlockSpec((tb, A), row_blk),        # mask    [b_pad, A]  (natural layout)
            pl.BlockSpec((H, S), resident),        # w1
            pl.BlockSpec((H, 1), resident),        # b1
            pl.BlockSpec((H, H), resident),        # w2
            pl.BlockSpec((H, 1), resident),        # b2
            pl.BlockSpec((A, H), resident),        # w3
            pl.BlockSpec((A, 1), resident),        # b3
        ],
        out_specs=pl.BlockSpec((A, tb), col_blk),
        compiler_params=pltpu.CompilerParams(
            dimension_semantics=("parallel",),     # shard batch tiles across TCs on v7x
        ),
        cost_estimate=cost,
    )(state, mask, w1b, b1, w2b, b2, w3b, b3)

    # Kernel output is lane-dense feature-major; flip to the PyTorch [B, A] layout.
    return out_t[:, :B].T


def init_params(key, state_dim, action_dim, hidden_dim):
    """Deterministic synthetic init matching nn.Linear shapes ([out,in] weights, [out,1] biases)."""
    ks = jax.random.split(key, 6)

    def lin(kw, kb, fan_in, fan_out):
        bound = 1.0 / jnp.sqrt(fan_in)
        w = jax.random.uniform(kw, (fan_out, fan_in), jnp.float32, -bound, bound)
        b = jax.random.uniform(kb, (fan_out, 1), jnp.float32, -bound, bound)
        return w, b

    w1, b1 = lin(ks[0], ks[1], state_dim, hidden_dim)
    w2, b2 = lin(ks[2], ks[3], hidden_dim, hidden_dim)
    w3, b3 = lin(ks[4], ks[5], hidden_dim, action_dim)
    return (w1, b1, w2, b2, w3, b3)


def actor_reference(state, mask, params, *, bf16_matmul=False):
    """Pure-JAX reference. bf16_matmul=True mirrors the kernel's bf16-input matmuls."""
    w1, b1, w2, b2, w3, b3 = params
    in_dt = jnp.bfloat16 if bf16_matmul else jnp.float32

    def lin(x, w, b):
        y = jnp.dot(x.astype(in_dt), w.T.astype(in_dt),
                    preferred_element_type=jnp.float32)
        return y + b.T

    h = jnp.maximum(lin(state, w1, b1), 0.0)
    h = jnp.maximum(lin(h, w2, b2), 0.0)
    logits = lin(h, w3, b3) + mask.astype(jnp.float32) * (-1e9)
    return jax.nn.softmax(logits, axis=-1)


if __name__ == "__main__":
    state_dim, action_dim, hidden_dim = 16, 8, 32

    key = jax.random.PRNGKey(0)
    k_params, k_data = jax.random.split(key)
    params = init_params(k_params, state_dim, action_dim, hidden_dim)

    def run_case(batch, batch_tile=4096):
        ks, km = jax.random.split(jax.random.fold_in(k_data, batch))
        state = jax.random.normal(ks, (batch, state_dim), jnp.float32)
        # mask: 1.0 for illegal actions (gets -1e9 added), 0.0 for legal actions.
        # Shipped as bf16 (0/1 exact) to halve its HBM traffic.
        mask = (jax.random.uniform(km, (batch, action_dim)) < 0.25).astype(jnp.bfloat16)

        probs = actor_forward(state, mask, params, batch_tile=batch_tile)
        jax.block_until_ready(probs)

        assert probs.shape == (batch, action_dim)
        # Tight check vs. a reference that matches the kernel's bf16-matmul numerics.
        ref_bf16 = actor_reference(state, mask, params, bf16_matmul=True)
        assert jnp.allclose(probs, ref_bf16, atol=2e-3, rtol=2e-3)
        # Sanity check vs. exact f32 (original PyTorch) semantics.
        ref_f32 = actor_reference(state, mask, params, bf16_matmul=False)
        assert jnp.allclose(probs, ref_f32, atol=5e-2, rtol=5e-2)
        # Exact divide in the kernel -> properly normalized distributions.
        assert jnp.allclose(jnp.sum(probs, axis=-1), 1.0, atol=1e-4)

    run_case(batch=8)     # tiny batch: single 128-wide lane tile, 1 grid step
    run_case(batch=260)   # padded batch: tb=256, 2-step "parallel" grid (v7x split)

    # TODO(synk): Actor.act() (Categorical sampling + log_prob) is host-side policy
    # logic and is intentionally not part of the Pallas kernel.
    print("KERNEL_OK")
</pallas_src>

<mosaic_0001>
module attributes {stable_mosaic.version = 11 : i64} {
  func.func @actor_kernel(%arg0: i32, %arg1: memref<128x16xf32, #tpu.memory_space<vmem>>, %arg2: memref<128x8xbf16, #tpu.memory_space<vmem>>, %arg3: memref<32x16xbf16, #tpu.memory_space<vmem>>, %arg4: memref<32x1xf32, #tpu.memory_space<vmem>>, %arg5: memref<32x32xbf16, #tpu.memory_space<vmem>>, %arg6: memref<32x1xf32, #tpu.memory_space<vmem>>, %arg7: memref<8x32xbf16, #tpu.memory_space<vmem>>, %arg8: memref<8x1xf32, #tpu.memory_space<vmem>>, %arg9: memref<8x128xf32, #tpu.memory_space<vmem>>) attributes {dimension_semantics = [#tpu.dimension_semantics<parallel>], iteration_bounds = array<i64: 1>, scalar_prefetch = 0 : i64, scratch_operands = 0 : i64, tpu.core_type = #tpu.core_type<tc>, window_params = [{transform_indices = @transform_0, window_bounds = array<i64: 128, 16>}, {transform_indices = @transform_1, window_bounds = array<i64: 128, 8>}, {pipeline_mode = #tpu.pipeline_mode<synchronous>, transform_indices = @transform_2, window_bounds = array<i64: 32, 16>}, {pipeline_mode = #tpu.pipeline_mode<synchronous>, transform_indices = @transform_3, window_bounds = array<i64: 32, 1>}, {pipeline_mode = #tpu.pipeline_mode<synchronous>, transform_indices = @transform_4, window_bounds = array<i64: 32, 32>}, {pipeline_mode = #tpu.pipeline_mode<synchronous>, transform_indices = @transform_5, window_bounds = array<i64: 32, 1>}, {pipeline_mode = #tpu.pipeline_mode<synchronous>, transform_indices = @transform_6, window_bounds = array<i64: 8, 32>}, {pipeline_mode = #tpu.pipeline_mode<synchronous>, transform_indices = @transform_7, window_bounds = array<i64: 8, 1>}, {transform_indices = @transform_8, window_bounds = array<i64: 8, 128>}]} {
    %c0 = arith.constant 0 : index
    %c0_0 = arith.constant 0 : index
    %0 = vector.load %arg1[%c0, %c0_0] : memref<128x16xf32, #tpu.memory_space<vmem>>, vector<128x16xf32>
    %1 = arith.truncf %0 : vector<128x16xf32> to vector<128x16xbf16>
    %c0_1 = arith.constant 0 : index
    %c0_2 = arith.constant 0 : index
    %2 = vector.load %arg3[%c0_1, %c0_2] : memref<32x16xbf16, #tpu.memory_space<vmem>>, vector<32x16xbf16>
    %cst = arith.constant dense<0.000000e+00> : vector<32x128xf32>
    %3 = tpu.matmul %2, %1, %cst {dimension_numbers = #tpu.dot_dimension_numbers<[1], [1], [0], [0], [0, 0, 1, 0], [], []>} : vector<32x16xbf16>, vector<128x16xbf16>, vector<32x128xf32> -> vector<32x128xf32>
    %c0_3 = arith.constant 0 : index
    %c0_4 = arith.constant 0 : index
    %4 = vector.load %arg4[%c0_3, %c0_4] : memref<32x1xf32, #tpu.memory_space<vmem>>, vector<32x1xf32>
    %5 = vector.broadcast %4 : vector<32x1xf32> to vector<32x128xf32>
    %6 = arith.addf %3, %5 : vector<32x128xf32>
    %cst_5 = arith.constant 0.000000e+00 : f32
    %7 = vector.broadcast %cst_5 : f32 to vector<32x128xf32>
    %8 = arith.maximumf %6, %7 : vector<32x128xf32>
    %9 = arith.truncf %8 : vector<32x128xf32> to vector<32x128xbf16>
    %c0_6 = arith.constant 0 : index
    %c0_7 = arith.constant 0 : index
    %10 = vector.load %arg5[%c0_6, %c0_7] : memref<32x32xbf16, #tpu.memory_space<vmem>>, vector<32x32xbf16>
    %cst_8 = arith.constant dense<0.000000e+00> : vector<32x128xf32>
    %11 = tpu.matmul %10, %9, %cst_8 {dimension_numbers = #tpu.dot_dimension_numbers<[1], [0], [0], [1], [0, 0, 1, 1], [], []>} : vector<32x32xbf16>, vector<32x128xbf16>, vector<32x128xf32> -> vector<32x128xf32>
    %c0_9 = arith.constant 0 : index
    %c0_10 = arith.constant 0 : index
    %12 = vector.load %arg6[%c0_9, %c0_10] : memref<32x1xf32, #tpu.memory_space<vmem>>, vector<32x1xf32>
    %13 = vector.broadcast %12 : vector<32x1xf32> to vector<32x128xf32>
    %14 = arith.addf %11, %13 : vector<32x128xf32>
    %cst_11 = arith.constant 0.000000e+00 : f32
    %15 = vector.broadcast %cst_11 : f32 to vector<32x128xf32>
    %16 = arith.maximumf %14, %15 : vector<32x128xf32>
    %17 = arith.truncf %16 : vector<32x128xf32> to vector<32x128xbf16>
    %18 = tpu.iota {dimensions = array<i32: 0>} : vector<8x8xi32>
    %19 = tpu.iota {dimensions = array<i32: 1>} : vector<8x8xi32>
    %20 = arith.cmpi eq, %18, %19 : vector<8x8xi32>
    %cst_12 = arith.constant 1.000000e+00 : f32
    %cst_13 = arith.constant 0.000000e+00 : f32
    %21 = vector.broadcast %cst_12 : f32 to vector<8x8xf32>
    %22 = vector.broadcast %cst_13 : f32 to vector<8x8xf32>
    %23 = arith.select %20, %21, %22 : vector<8x8xi1>, vector<8x8xf32>
    %24 = arith.truncf %23 : vector<8x8xf32> to vector<8x8xbf16>
    %c0_14 = arith.constant 0 : index
    %c0_15 = arith.constant 0 : index
    %25 = vector.load %arg2[%c0_14, %c0_15] : memref<128x8xbf16, #tpu.memory_space<vmem>>, vector<128x8xbf16>
    %cst_16 = arith.constant dense<0.000000e+00> : vector<8x128xf32>
    %26 = tpu.matmul %24, %25, %cst_16 {dimension_numbers = #tpu.dot_dimension_numbers<[1], [1], [0], [0], [0, 0, 1, 0], [], []>} : vector<8x8xbf16>, vector<128x8xbf16>, vector<8x128xf32> -> vector<8x128xf32>
    %c0_17 = arith.constant 0 : index
    %c0_18 = arith.constant 0 : index
    %27 = vector.load %arg7[%c0_17, %c0_18] : memref<8x32xbf16, #tpu.memory_space<vmem>>, vector<8x32xbf16>
    %cst_19 = arith.constant dense<0.000000e+00> : vector<8x128xf32>
    %28 = tpu.matmul %27, %17, %cst_19 {dimension_numbers = #tpu.dot_dimension_numbers<[1], [0], [0], [1], [0, 0, 1, 1], [], []>} : vector<8x32xbf16>, vector<32x128xbf16>, vector<8x128xf32> -> vector<8x128xf32>
    %c0_20 = arith.constant 0 : index
    %c0_21 = arith.constant 0 : index
    %29 = vector.load %arg8[%c0_20, %c0_21] : memref<8x1xf32, #tpu.memory_space<vmem>>, vector<8x1xf32>
    %30 = vector.broadcast %29 : vector<8x1xf32> to vector<8x128xf32>
    %31 = arith.addf %28, %30 : vector<8x128xf32>
    %cst_22 = arith.constant 1.000000e+09 : f32
    %32 = vector.broadcast %cst_22 : f32 to vector<8x128xf32>
    %33 = arith.mulf %26, %32 : vector<8x128xf32>
    %34 = arith.subf %31, %33 : vector<8x128xf32>
    %cst_23 = arith.constant dense<0xFF800000> : vector<128xf32>
    %35 = vector.multi_reduction <maximumf>, %34, %cst_23 [0] : vector<8x128xf32> to vector<128xf32>
    %36 = vector.shape_cast %35 : vector<128xf32> to vector<1x128xf32>
    %37 = vector.broadcast %36 : vector<1x128xf32> to vector<8x128xf32>
    %38 = arith.subf %34, %37 : vector<8x128xf32>
    %39 = math.exp %38 : vector<8x128xf32>
    %cst_24 = arith.constant dense<0.000000e+00> : vector<128xf32>
    %40 = vector.multi_reduction <add>, %39, %cst_24 [0] : vector<8x128xf32> to vector<128xf32>
    %41 = vector.shape_cast %40 : vector<128xf32> to vector<1x128xf32>
    %42 = vector.broadcast %41 : vector<1x128xf32> to vector<8x128xf32>
    %43 = arith.divf %39, %42 : vector<8x128xf32>
    %c0_25 = arith.constant 0 : index
    %c0_26 = arith.constant 0 : index
    %44 = vector.load %arg9[%c0_25, %c0_26] : memref<8x128xf32, #tpu.memory_space<vmem>>, vector<8x128xf32>
    tpu.vector_store %arg9[%c0_25, %c0_26], %43 {strides = array<i32>} : memref<8x128xf32, #tpu.memory_space<vmem>>, vector<8x128xf32>,
    return
  }
  func.func @transform_0(%arg0: i32) -> (i32, i32) {
    %c0_i32 = arith.constant 0 : i32
    %c0_i32_0 = arith.constant 0 : i32
    return %arg0, %c0_i32 : i32, i32
  }
  func.func @transform_1(%arg0: i32) -> (i32, i32) {
    %c0_i32 = arith.constant 0 : i32
    %c0_i32_0 = arith.constant 0 : i32
    return %arg0, %c0_i32 : i32, i32
  }
  func.func @transform_2(%arg0: i32) -> (i32, i32) {
    %c0_i32 = arith.constant 0 : i32
    %c0_i32_0 = arith.constant 0 : i32
    %c0_i32_1 = arith.constant 0 : i32
    return %c0_i32, %c0_i32_0 : i32, i32
  }
  func.func @transform_3(%arg0: i32) -> (i32, i32) {
    %c0_i32 = arith.constant 0 : i32
    %c0_i32_0 = arith.constant 0 : i32
    %c0_i32_1 = arith.constant 0 : i32
    return %c0_i32, %c0_i32_0 : i32, i32
  }
  func.func @transform_4(%arg0: i32) -> (i32, i32) {
    %c0_i32 = arith.constant 0 : i32
    %c0_i32_0 = arith.constant 0 : i32
    %c0_i32_1 = arith.constant 0 : i32
    return %c0_i32, %c0_i32_0 : i32, i32
  }
  func.func @transform_5(%arg0: i32) -> (i32, i32) {
    %c0_i32 = arith.constant 0 : i32
    %c0_i32_0 = arith.constant 0 : i32
    %c0_i32_1 = arith.constant 0 : i32
    return %c0_i32, %c0_i32_0 : i32, i32
  }
  func.func @transform_6(%arg0: i32) -> (i32, i32) {
    %c0_i32 = arith.constant 0 : i32
    %c0_i32_0 = arith.constant 0 : i32
    %c0_i32_1 = arith.constant 0 : i32
    return %c0_i32, %c0_i32_0 : i32, i32
  }
  func.func @transform_7(%arg0: i32) -> (i32, i32) {
    %c0_i32 = arith.constant 0 : i32
    %c0_i32_0 = arith.constant 0 : i32
    %c0_i32_1 = arith.constant 0 : i32
    return %c0_i32, %c0_i32_0 : i32, i32
  }
  func.func @transform_8(%arg0: i32) -> (i32, i32) {
    %c0_i32 = arith.constant 0 : i32
    %c0_i32_0 = arith.constant 0 : i32
    return %c0_i32, %arg0 : i32, i32
  }
}

</mosaic_0001>

<bundles_post_ra>
// kernel: actor_forward.1
= control target key start
LH: loop header
LB: loop body
LE: loop exit
PB: predicated region body
PF: predicated region fallthrough
CT: control target
= control target key end

     0   :  { %vm92_vm0 = vcmask 130048   ;;  %v612_v3 = vmov 0   ;;  %vm216_vm1 = vcmask 261120   ;;  %v613_v45 = vmov 0.0   ;;  %s820_s0 = inlined_call_operand.vmem [shape: f32[128,16], index: 0, kind: input, shape index: {}]   ;;  %s821_s2 = inlined_call_operand.vmem [shape: bf16[32,16], index: 2, kind: input, shape index: {}]   ;;  %s822_s3 = inlined_call_operand.vmem [shape: f32[32,1], index: 3, kind: input, shape index: {}]   ;;  %s823_s5 = inlined_call_operand.vmem [shape: f32[32,1], index: 5, kind: input, shape index: {}]   ;;  %s824_s7 = inlined_call_operand.vmem [shape: f32[8,1], index: 7, kind: input, shape index: {}]   ;;  %s825_s4 = inlined_call_operand.vmem [shape: bf16[32,32], index: 4, kind: input, shape index: {}]   ;;  %s826_s1 = inlined_call_operand.vmem [shape: bf16[128,8], index: 1, kind: input, shape index: {}]   ;;  %s827_s6 = inlined_call_operand.vmem [shape: bf16[8,32], index: 6, kind: input, shape index: {}]   ;;  %s828_s8 = inlined_call_operand.vmem [shape: f32[8,128], index: 8, kind: output, shape index: {}]  }
   0x1   :  { %v30_v0 = vld [vmem:[%s820_s0] sm:$0xff]  ;;  %v31_v1 = vld [vmem:[%s820_s0 + $0x8] sm:$0xff]  ;;  %v32_v2 = vld [vmem:[%s820_s0 + $0x10] sm:$0xff]  ;;  %594 = vset.pattern.permute.xlu0 %v612_v3  ;;  %595 = vset.pattern.permute.xlu1 %v612_v3  ;;  %vm341_vm2 = vcmask 64512   ;;  %vm614_vm4 = vmmov 0  }
   0x2   :  { %v46_v4 = vpack.c.bf16 %v31_v1, %v30_v0  ;;  %v33_v5 = vld [vmem:[%s820_s0 + $0x18] sm:$0xff]  ;;  %v34_v8 = vld [vmem:[%s820_s0 + $0x20] sm:$0xff]  ;;  %v35_v9 = vld [vmem:[%s820_s0 + $0x28] sm:$0xff] }
   0x3   :  { %v47_v6 = vpack.c.bf16 %v33_v5, %v32_v2  ;;  %v596_v10 = vld [vmem:[%s821_s2] sm:$0xff]   ;;  %v60_v12 = vld [vmem:[%s822_s3 + $0x10] sm:$0xff]  ;;  %v48_v14 = vpack.c.bf16 %v35_v9, %v34_v8  ;;  %v59_v15 = vld [vmem:[%s822_s3 + $0x8] sm:$0xff] }
   0x4   :  { %583 = vmatprep.subr.msk.bf16.mxu0 %vm92_vm0, %v46_v4  ;;  %v100_v7 = vsel %vm92_vm0, %v46_v4, 0  ;;  %v58_v11 = vld [vmem:[%s822_s3] sm:$0xff]  ;;  %543 = vmatprep.mubr.msk.bf16.mxu0 %vm92_vm0, %v596_v10  ;;  %v61_v16 = vld [vmem:[%s822_s3 + $0x18] sm:$0xff]  ;;  %v36_v18 = vld [vmem:[%s820_s0 + $0x30] sm:$0xff] }
   0x5   :  { %528 = vmatpush3.bf16.xpose.msra.mxu0 %v100_v7  ;;  %64 = vperm.xlu0 %594, %v58_v11   ;;  %v103_v13 = vsel %vm92_vm0, %v47_v6, 0  ;;  %v182_v17 = vld [vmem:[%s823_s5] sm:$0xff]  ;;  %v37_v19 = vld [vmem:[%s820_s0 + $0x38] sm:$0xff]  ;;  %v183_v20 = vld [vmem:[%s823_s5 + $0x8] sm:$0xff]  ;;  %v106_v21 = vsel %vm92_vm0, %v48_v14, 0 }
   0x6   :  { %584 = vmatprep.subr.msk.bf16.mxu0 %vm92_vm0, %v47_v6  ;;  %74 = vperm.xlu1 %595, %v60_v12   ;;  %v49_v22 = vpack.c.bf16 %v37_v19, %v36_v18  ;;  %v184_v23 = vld [vmem:[%s823_s5 + $0x10] sm:$0xff]  ;;  %v185_v24 = vld [vmem:[%s823_s5 + $0x18] sm:$0xff]  ;;  %v410_v25 = vld [vmem:[%s824_s7] sm:$0xff] }
   0x7   :  { %v38_v26 = vld [vmem:[%s820_s0 + $0x40] sm:$0xff]  ;;  %v39_v27 = vld [vmem:[%s820_s0 + $0x48] sm:$0xff]  ;;  %v40_v30 = vld [vmem:[%s820_s0 + $0x50] sm:$0xff] }
   0x8   :  { %v109_v28 = vsel %vm92_vm0, %v49_v22, 0  ;;  %v50_v29 = vpack.c.bf16 %v39_v27, %v38_v26  ;;  %v41_v31 = vld [vmem:[%s820_s0 + $0x58] sm:$0xff]  ;;  %v42_v34 = vld [vmem:[%s820_s0 + $0x60] sm:$0xff]  ;;  %v43_v35 = vld [vmem:[%s820_s0 + $0x68] sm:$0xff] }
   0x9   :  { %69 = vperm.xlu0 %594, %v59_v15   ;;  %v51_v33 = vpack.c.bf16 %v41_v31, %v40_v30  ;;  %v52_v37 = vpack.c.bf16 %v43_v35, %v42_v34  ;;  %v44_v38 = vld [vmem:[%s820_s0 + $0x70] sm:$0xff]  ;;  %v45_v39 = vld [vmem:[%s820_s0 + $0x78] sm:$0xff]  ;;  %v597_v43 = vld [vmem:[%s821_s2 + $0x8] sm:$0xff]  }
   0xa   :  { %79 = vperm.xlu1 %595, %v61_v16   ;;  %v112_v32 = vsel %vm92_vm0, %v50_v29, 0  ;;  %v53_v41 = vpack.c.bf16 %v45_v39, %v44_v38  ;;  %v598_v44 = vld [vmem:[%s825_s4] sm:$0xff]   ;;  %v599_v0 = vld [vmem:[%s825_s4 + $0x8] sm:$0xff]   ;;  %v602_v5 = vld [vmem:[%s826_s1 + $0x10] sm:$0xff]  }
   0xb   :  { %v115_v36 = vsel %vm92_vm0, %v51_v33, 0  ;;  %v118_v40 = vsel %vm92_vm0, %v52_v37, 0  ;;  %551 = vmatprep.mubr.msk.bf16.mxu1 %vm216_vm1, %v598_v44  ;;  %v600_v1 = vld [vmem:[%s826_s1] sm:$0xff]   ;;  %v601_v3 = vld [vmem:[%s826_s1 + $0x8] sm:$0xff]   ;;  %v352_v6 = vsel %vm341_vm2, %v602_v5, 0  ;;  %v603_v7 = vld [vmem:[%s826_s1 + $0x18] sm:$0xff]  }
   0xc   :  { %v121_v42 = vsel %vm92_vm0, %v53_v41, 0  ;;  %v346_v2 = vsel %vm341_vm2, %v600_v1, 0  ;;  %v349_v4 = vsel %vm341_vm2, %v601_v3, 0  ;;  %v355_v8 = vsel %vm341_vm2, %v603_v7, 0  ;;  %v604_v9 = vld [vmem:[%s826_s1 + $0x20] sm:$0xff]   ;;  %v605_v11 = vld [vmem:[%s826_s1 + $0x28] sm:$0xff]  }
   0xd   :  { %530 = vmatpush3.bf16.xpose.msra.mxu0 %v103_v13  ;;  %188 = vperm.xlu0 %594, %v182_v17   ;;  %v358_v10 = vsel %vm341_vm2, %v604_v9, 0  ;;  %v361_v12 = vsel %vm341_vm2, %v605_v11, 0  ;;  %v606_v13 = vld [vmem:[%s826_s1 + $0x30] sm:$0xff]   ;;  %v607_v15 = vld [vmem:[%s826_s1 + $0x38] sm:$0xff]   ;;  %v278_v17 = vlaneseq }
   0xe   :  { %585 = vmatprep.subr.msk.bf16.mxu0 %vm92_vm0, %v48_v14  ;;  %193 = vperm.xlu1 %595, %v183_v20   ;;  %v364_v14 = vsel %vm341_vm2, %v606_v13, 0  ;;  %v367_v16 = vsel %vm341_vm2, %v607_v15, 0 }
   0xf   :  { %v279_v18 = vshrl.u32 %v278_v17, 7  ;;  %v281_v19 = vand.u32 127, %v278_v17 }
  0x11   :  { %198 = vperm.xlu0 %594, %v184_v23   ;;  %vm282_vm3 = vcmp.eq.s32.totalorder %v279_v18, %v281_v19 }
  0x12   :  { %203 = vperm.xlu1 %595, %v185_v24   ;;  %v283_v20 = vsel %vm282_vm3, 1.0, %v613_v45 }
  0x15   :  { %532 = vmatpush3.bf16.xpose.msra.mxu0 %v106_v21  ;;  %413 = vperm.xlu0 %594, %v410_v25   ;;  %v284_v21 = vpack.c.bf16 %v283_v20, %v283_v20 }
  0x16   :  { %586 = vmatprep.subr.msk.bf16.mxu0 %vm92_vm0, %v49_v22 }
  0x1d   :  { %534 = vmatpush3.bf16.xpose.msra.mxu0 %v109_v28 }
  0x1e   :  { %587 = vmatprep.subr.msk.bf16.mxu0 %vm92_vm0, %v50_v29 }
  0x25   :  { %536 = vmatpush3.bf16.xpose.msra.mxu0 %v112_v32 }
  0x26   :  { %588 = vmatprep.subr.msk.bf16.mxu0 %vm92_vm0, %v51_v33 }
  0x2d   :  { %538 = vmatpush3.bf16.xpose.msra.mxu0 %v115_v36 }
  0x2e   :  { %589 = vmatprep.subr.msk.bf16.mxu0 %vm92_vm0, %v52_v37 }
  0x35   :  { %540 = vmatpush3.bf16.xpose.msra.mxu0 %v118_v40  ;;  %v409_v40 = vld [vmem:[%s827_s6] sm:$0xf] }
  0x36   :  { %590 = vmatprep.subr.msk.bf16.mxu0 %vm92_vm0, %v53_v41 }
  0x3d   :  { %542 = vmatpush3.bf16.xpose.msra.mxu0 %v121_v42 }
  0x3e   :  { %575 = vmatprep.subr.bf16.mxu0 %v613_v45 }
  0x44   :  { %544 = vmatmul.mubr.msk.bf16.vlgmr.msra.gmra.mrb[0].mxu0 %vm92_vm0, %v597_v43 }
  0x45   :  { %579 = vmatprep.mubr.msk.bf16.mxu0 %vm614_vm4, %v613_v45 }
  0x84   :  { %v65_v47 = vpop.permute.xlu0 %64 }
  0x85   :  { %v75_v46 = vpop.permute.xlu1 %74 }
  0x88   :  { %v70_v54 = vpop.permute.xlu0 %69 }
  0x89   :  { %v80_v51 = vpop.permute.xlu1 %79 }
  0x8c   :  { %v189_v22 = vpop.permute.xlu0 %188 }
  0x8d   :  { %v194_v23 = vpop.permute.xlu1 %193 }
  0x90   :  { %v199_v24 = vpop.permute.xlu0 %198 }
  0x91   :  { %v204_v28 = vpop.permute.xlu1 %203 }
 0x117   :  { %v545_v48 = vpop.f32.mrb[0].mxu0 }
 0x118   :  { %v166_v49 = vadd.f32 %v545_v48, %v75_v46  ;;  %v157_v50 = vpop.f32.mrb[1].mxu0 }
 0x119   :  { %v158_v52 = vadd.f32 %v157_v50, %v65_v47  ;;  %v546_v53 = vpop.f32.mrb[2].mxu0  ;;  %v414_v47 = vpop.permute.xlu0 %413 }
 0x11a   :  { %v169_v55 = vadd.f32 %v546_v53, %v80_v51  ;;  %v160_v56 = vpop.f32.mrb[3].mxu0  ;;  %v174_v58 = vmax.f32 %v166_v49, 0.0 }
 0x11b   :  { %v161_v57 = vadd.f32 %v160_v56, %v70_v54  ;;  %v172_v60 = vmax.f32 %v158_v52, 0.0 }
 0x11c   :  { %v175_v59 = vmax.f32 %v169_v55, 0.0 }
 0x11d   :  { %v173_v61 = vmax.f32 %v161_v57, 0.0 }
 0x11e   :  { %v177_v62 = vpack.c.bf16 %v175_v59, %v174_v58 }
 0x11f   :  { %v176_v63 = vpack.c.bf16 %v173_v61, %v172_v60 }
 0x121   :  { %547 = vmatprep.subr.bf16.mxu1 %v176_v63 }
 0x122   :  { %548 = vmatpush3.bf16.msra.mxu1 %v176_v63 }
 0x123   :  { %549 = vmatprep.subr.bf16.mxu1 %v177_v62 }
 0x126   :  { %550 = vmatpush3.bf16.msra.mxu1 %v177_v62 }
 0x127   :  { %555 = vmatprep.subr.bf16.mxu1 %v613_v45 }
 0x129   :  { %552 = vmatmul.mubr.msk.bf16.vlgmr.msra.gmra.mrb[0].mxu1 %vm216_vm1, %v599_v0 }
 0x12a   :  { %571 = vmatprep.mubr.msk.bf16.mxu1 %vm614_vm4, %v613_v45 }
 0x12f   :  { %556 = vmatpush3.bf16.xpose.msra.mxu1 %v346_v2 }
 0x130   :  { %557 = vmatprep.subr.bf16.mxu1 %v613_v45 }
 0x137   :  { %558 = vmatpush3.bf16.xpose.msra.mxu1 %v349_v4 }
 0x138   :  { %559 = vmatprep.subr.bf16.mxu1 %v613_v45 }
 0x13f   :  { %560 = vmatpush3.bf16.xpose.msra.mxu1 %v352_v6 }
 0x140   :  { %561 = vmatprep.subr.bf16.mxu1 %v613_v45 }
 0x147   :  { %562 = vmatpush3.bf16.xpose.msra.mxu1 %v355_v8 }
 0x148   :  { %563 = vmatprep.subr.bf16.mxu1 %v613_v45 }
 0x14f   :  { %564 = vmatpush3.bf16.xpose.msra.mxu1 %v358_v10 }
 0x150   :  { %565 = vmatprep.subr.bf16.mxu1 %v613_v45 }
 0x157   :  { %566 = vmatpush3.bf16.xpose.msra.mxu1 %v361_v12 }
 0x158   :  { %567 = vmatprep.subr.bf16.mxu1 %v613_v45 }
 0x15f   :  { %568 = vmatpush3.bf16.xpose.msra.mxu1 %v364_v14 }
 0x160   :  { %569 = vmatprep.subr.bf16.mxu1 %v613_v45 }
 0x167   :  { %570 = vmatpush3.bf16.xpose.msra.mxu1 %v367_v16 }
 0x16e   :  { %572 = vmatmul.mubr.msk.bf16.vlgmr.msra.gmra.mrb[4].mxu1 %vm341_vm2, %v284_v21 }
 0x1fc   :  { %v553_v25 = vpop.f32.mrb[0].mxu1 }
 0x1fd   :  { %v266_v26 = vadd.f32 %v553_v25, %v199_v24  ;;  %v257_v27 = vpop.f32.mrb[1].mxu1 }
 0x1fe   :  { %v258_v29 = vadd.f32 %v257_v27, %v189_v22  ;;  %v554_v30 = vpop.f32.mrb[2].mxu1 }
 0x1ff   :  { %v269_v31 = vadd.f32 %v554_v30, %v204_v28  ;;  %v260_v32 = vpop.f32.mrb[3].mxu1  ;;  %v274_v34 = vmax.f32 %v266_v26, 0.0 }
 0x200   :  { %v261_v33 = vadd.f32 %v260_v32, %v194_v23  ;;  %v272_v36 = vmax.f32 %v258_v29, 0.0 }
 0x201   :  { %v275_v35 = vmax.f32 %v269_v31, 0.0 }
 0x202   :  { %v273_v37 = vmax.f32 %v261_v33, 0.0 }
 0x203   :  { %v277_v38 = vpack.c.bf16 %v275_v35, %v274_v34 }
 0x204   :  { %v276_v39 = vpack.c.bf16 %v273_v37, %v272_v36 }
 0x206   :  { %576 = vmatpush3.bf16.msra.mxu0 %v276_v39 }
 0x207   :  { %577 = vmatprep.subr.bf16.mxu0 %v613_v45 }
 0x20a   :  { %578 = vmatpush3.bf16.msra.mxu0 %v277_v38 }
 0x20d   :  { %580 = vmatmul.mubr.msk.bf16.vlgmr.msra.gmra.mrb[4].mxu0 %vm216_vm1, %v409_v40 }
 0x241   :  { %v403_v41 = vpop.f32.mrb[4].mxu1 }
 0x242   :  { %v573_v42 = vpop.f32.mrb[5].mxu1  ;;  %v459_v46 = vmul.f32 1e+09, %v403_v41 }
 0x243   :  { %v406_v43 = vpop.f32.mrb[6].mxu1 }
 0x244   :  { %v574_v44 = vpop.f32.mrb[7].mxu1 }
 0x2e0   :  { %v453_v48 = vpop.f32.mrb[4].mxu0 }
 0x2e1   :  { %v454_v49 = vadd.f32 %v453_v48, %v414_v47  ;;  %v581_v50 = vpop.f32.mrb[5].mxu0 }
 0x2e2   :  { %v456_v51 = vpop.f32.mrb[6].mxu0 }
 0x2e3   :  { %v460_v52 = vsub.f32 %v454_v49, %v459_v46  ;;  %v582_v53 = vpop.f32.mrb[7].mxu0 }
 0x2e5   :  { %v461_v45 = vrot.slane %v460_v52, 4 }
 0x2e7   :  { %v462_v54 = vmax.f32 %v460_v52, %v461_v45 }
 0x2e9   :  { %v463_v55 = vrot.slane %v462_v54, 2 }
 0x2eb   :  { %v464_v56 = vmax.f32 %v462_v54, %v463_v55 }
 0x2ed   :  { %v465_v57 = vrot.slane %v464_v56, 1 }
 0x2ef   :  { %v466_v58 = vmax.f32 %v464_v56, %v465_v57 }
 0x2f1   :  { %v467_v59 = vsub.f32 %v460_v52, %v466_v58 }
 0x2f3   :  { %v468_v60 = vmul.f32 1.442695, %v467_v59 }
 0x2f5   :  { %608 = vpow2.f32 %v468_v60 }
 0x2ff   :  { %v609_v61 = vpop.eup %608 }
 0x300   :  { %v470_v62 = vrot.slane %v609_v61, 4 }
 0x302   :  { %v471_v63 = vadd.f32 %v609_v61, %v470_v62 }
 0x304   :  { %v472_v0 = vrot.slane %v471_v63, 2 }
 0x306   :  { %v473_v1 = vadd.f32 %v472_v0, %v471_v63 }
 0x308   :  { %v474_v2 = vrot.slane %v473_v1, 1 }
 0x30a   :  { %v475_v3 = vadd.f32 %v474_v2, %v473_v1 }
 0x30c   :  { %610 = vrcp.f32 %v475_v3 }
 0x316   :  { %v611_v4 = vpop.eup %610 }
 0x317   :  { %v477_v5 = vmul.f32 %v611_v4, %v609_v61 }
 0x319   :  { %478 = vst [vmem:[%s828_s8] sm:$0xff] %v477_v5 }

</bundles_post_ra>
